<compile_context>
chip_gen: v7x
topology: tpu7x:2x2x1
jax: 0.10.0
libtpu: 0.0.40
codegen_flags: <defaults>
</compile_context>

<pallas_src>
import functools

import jax
import jax.numpy as jnp
from jax.experimental import pallas as pl
from jax.experimental.pallas import tpu as pltpu

LANE = 128  # TPU lane width; all feature dims and the node dim are padded to this


def _round_up(x, m):
    return ((x + m - 1) // m) * m


def _pad2d(x, rows, cols):
    return jnp.pad(x, ((0, rows - x.shape[0]), (0, cols - x.shape[1])))


# ---------------------------------------------------------------------------
# Fused kernel: the full SAGEConv stack in one kernel body.
# refs = (adj, h0, w0, b0, w1, b1, ..., out0, out1, ..., out_{L-1})
# ---------------------------------------------------------------------------
def _fused_graphsage_kernel(*refs, n_layers, layer_modes):
    adj = refs[0][...]                       # (Np, Np)  bf16 row-normalized adjacency
    h = refs[1][...]                         # (Np, F0p) f32 input features
    wb_refs = refs[2:2 + 2 * n_layers]       # interleaved (merged weight bf16, bias f32)
    out_refs = refs[2 + 2 * n_layers:]       # one f32 output per layer (lane-dense)

    for l in range(n_layers):                # unrolled at trace time (L is small)
        w = wb_refs[2 * l][...]              # merged bf16 weight
        b = wb_refs[2 * l + 1][...]          # (1, Fout_p) f32 bias
        h_bf = h.astype(jnp.bfloat16)

        if layer_modes[l] == "aggregate_first":
            # h_neigh = A @ h ; out = [h | h_neigh] @ [[W_self],[W_neigh]] + b
            h_neigh = jnp.dot(adj, h_bf, preferred_element_type=jnp.float32)
            hcat = jnp.concatenate([h_bf, h_neigh.astype(jnp.bfloat16)], axis=-1)
            out = jnp.dot(hcat, w, preferred_element_type=jnp.float32) + b
        else:
            # project first (cheaper when Fout_p < Fin_p):
            # proj = h @ [W_self | W_neigh] ; out = proj_self + A @ proj_neigh + b
            proj = jnp.dot(h_bf, w, preferred_element_type=jnp.float32)
            fo = proj.shape[-1] // 2
            out = (proj[:, :fo]
                   + jnp.dot(adj, proj[:, fo:].astype(jnp.bfloat16),
                             preferred_element_type=jnp.float32)
                   + b)

        if l != n_layers - 1:                # activation on all but the last layer
            out = jnp.maximum(out, 0.0)      # f32 VPU epilogue, lane-dense store
        out_refs[l][...] = out
        h = out                              # stays in VMEM / vregs across layers


# ---------------------------------------------------------------------------
# Host wrapper: padding, weight merging, single pallas_call, unpadding.
# ---------------------------------------------------------------------------
def graphsage_forward(adj, inputs, params):
    """Mirrors GraphSAGE.forward: returns (h, middle_feats)."""
    n, f0 = inputs.shape
    n_layers = len(params)
    n_pad = _round_up(n, LANE)

    dims = [f0] + [w.shape[1] for (w, _, _) in params]
    dims_pad = [_round_up(d, LANE) for d in dims]

    adj_p = _pad2d(adj, n_pad, n_pad).astype(jnp.bfloat16)
    h_p = _pad2d(inputs, n_pad, dims_pad[0]).astype(jnp.float32)

    layer_modes = []
    wb_flat = []
    for l, (w_self, w_neigh, bias) in enumerate(params):
        fi_p, fo_p = dims_pad[l], dims_pad[l + 1]
        ws = _pad2d(w_self, fi_p, fo_p)
        wn = _pad2d(w_neigh, fi_p, fo_p)
        if fo_p < fi_p:
            mode = "project_first"
            w_merged = jnp.concatenate([ws, wn], axis=1)     # (Fin_p, 2*Fout_p)
        else:
            mode = "aggregate_first"
            w_merged = jnp.concatenate([ws, wn], axis=0)     # (2*Fin_p, Fout_p)
        layer_modes.append(mode)
        wb_flat.append(w_merged.astype(jnp.bfloat16))
        wb_flat.append(_pad2d(bias, 1, fo_p).astype(jnp.float32))

    vmem = pl.BlockSpec(memory_space=pltpu.MemorySpace.VMEM)
    out_shapes = tuple(
        jax.ShapeDtypeStruct((n_pad, dims_pad[l + 1]), jnp.float32)
        for l in range(n_layers))

    outs = pl.pallas_call(
        functools.partial(_fused_graphsage_kernel,
                          n_layers=n_layers, layer_modes=tuple(layer_modes)),
        out_shape=out_shapes,
        in_specs=[vmem] * (2 + 2 * n_layers),
        out_specs=tuple(vmem for _ in range(n_layers)),
        compiler_params=pltpu.CompilerParams(
            vmem_limit_bytes=32 * 1024 * 1024),
    )(adj_p, h_p, *wb_flat)

    # Unpad: middle_feats = [input, act(layer1), ..., act(layer_{L-1}), layer_L]
    middle_feats = [inputs]
    for l in range(n_layers):
        middle_feats.append(outs[l][:n, :dims[l + 1]])
    return middle_feats[-1], middle_feats


# ---------------------------------------------------------------------------
# Parameter / graph construction (deterministic) and a pure-JAX reference.
# ---------------------------------------------------------------------------
def init_params(key, in_feats, n_hidden, n_classes, n_layers):
    dims = [in_feats] + [n_hidden] * (n_layers - 1) + [n_classes]
    params = []
    for l in range(n_layers):
        fi, fo = dims[l], dims[l + 1]
        key, k1, k2, k3 = jax.random.split(key, 4)
        scale = 1.0 / jnp.sqrt(jnp.float32(fi))
        w_self = jax.random.uniform(k1, (fi, fo), jnp.float32, -scale, scale)
        w_neigh = jax.random.uniform(k2, (fi, fo), jnp.float32, -scale, scale)
        bias = jax.random.uniform(k3, (1, fo), jnp.float32, -scale, scale)
        params.append((w_self, w_neigh, bias))
    return params


def build_graph(key, n_nodes):
    """Deterministic random directed graph -> dense row-normalized adjacency."""
    mask = jax.random.bernoulli(key, 0.2, (n_nodes, n_nodes)).astype(jnp.float32)
    mask = mask * (1.0 - jnp.eye(n_nodes, dtype=jnp.float32))  # no self loops
    in_deg = jnp.sum(mask, axis=1, keepdims=True)
    return mask / jnp.maximum(in_deg, 1.0)  # zero-in-degree nodes aggregate to zero


def _reference_forward(adj, inputs, params):
    """Pure-JAX reference emulating the kernel's bf16-operand / f32-accumulate math."""
    bf = lambda x: x.astype(jnp.bfloat16).astype(jnp.float32)
    adj_b = bf(adj)
    h = inputs
    feats = [inputs]
    n_layers = len(params)
    for l, (w_self, w_neigh, bias) in enumerate(params):
        hb = bf(h)
        h_neigh = jnp.dot(adj_b, hb)
        out = (jnp.dot(hb, bf(w_self))
               + jnp.dot(bf(h_neigh), bf(w_neigh))
               + bias)
        if l != n_layers - 1:
            out = jnp.maximum(out, 0.0)
        feats.append(out)
        h = out
    return h, feats


if __name__ == "__main__":
    N = 64          # number of graph nodes
    IN_FEATS = 16
    N_HIDDEN = 32
    N_CLASSES = 8
    N_LAYERS = 3    # -> SAGEConv(16,32), SAGEConv(32,32), SAGEConv(32,8)

    key = jax.random.PRNGKey(0)
    k_graph, k_feat, k_param = jax.random.split(key, 3)

    adj = build_graph(k_graph, N)
    inputs = jax.random.normal(k_feat, (N, IN_FEATS), jnp.float32)
    params = init_params(k_param, IN_FEATS, N_HIDDEN, N_CLASSES, N_LAYERS)

    h, middle_feats = graphsage_forward(adj, inputs, params)
    h = jax.block_until_ready(h)
    for f in middle_feats:
        jax.block_until_ready(f)

    assert h.shape == (N, N_CLASSES)
    assert len(middle_feats) == N_LAYERS + 1

    ref_h, ref_feats = _reference_forward(adj, inputs, params)
    assert jnp.allclose(h, ref_h, atol=5e-3, rtol=5e-3), "final output mismatch"
    for got, want in zip(middle_feats, ref_feats):
        assert jnp.allclose(got, want, atol=5e-3, rtol=5e-3), "middle feat mismatch"

    print("KERNEL_OK")
</pallas_src>

<mosaic_0001>
module attributes {stable_mosaic.version = 11 : i64} {
  func.func @_fused_graphsage_kernel(%arg0: memref<128x128xbf16, #tpu.memory_space<vmem>>, %arg1: memref<128x128xf32, #tpu.memory_space<vmem>>, %arg2: memref<256x128xbf16, #tpu.memory_space<vmem>>, %arg3: memref<1x128xf32, #tpu.memory_space<vmem>>, %arg4: memref<256x128xbf16, #tpu.memory_space<vmem>>, %arg5: memref<1x128xf32, #tpu.memory_space<vmem>>, %arg6: memref<256x128xbf16, #tpu.memory_space<vmem>>, %arg7: memref<1x128xf32, #tpu.memory_space<vmem>>, %arg8: memref<128x128xf32, #tpu.memory_space<vmem>>, %arg9: memref<128x128xf32, #tpu.memory_space<vmem>>, %arg10: memref<128x128xf32, #tpu.memory_space<vmem>>) attributes {dimension_semantics = [], scalar_prefetch = 0 : i64, scratch_operands = 0 : i64, tpu.core_type = #tpu.core_type<tc>} {
    %c0 = arith.constant 0 : index
    %c0_0 = arith.constant 0 : index
    %0 = vector.load %arg0[%c0, %c0_0] : memref<128x128xbf16, #tpu.memory_space<vmem>>, vector<128x128xbf16>
    %c0_1 = arith.constant 0 : index
    %c0_2 = arith.constant 0 : index
    %1 = vector.load %arg1[%c0_1, %c0_2] : memref<128x128xf32, #tpu.memory_space<vmem>>, vector<128x128xf32>
    %c0_3 = arith.constant 0 : index
    %c0_4 = arith.constant 0 : index
    %2 = vector.load %arg2[%c0_3, %c0_4] : memref<256x128xbf16, #tpu.memory_space<vmem>>, vector<256x128xbf16>
    %c0_5 = arith.constant 0 : index
    %c0_6 = arith.constant 0 : index
    %3 = vector.load %arg3[%c0_5, %c0_6] : memref<1x128xf32, #tpu.memory_space<vmem>>, vector<1x128xf32>
    %4 = arith.truncf %1 : vector<128x128xf32> to vector<128x128xbf16>
    %cst = arith.constant dense<0.000000e+00> : vector<128x128xf32>
    %5 = tpu.matmul %0, %4, %cst {dimension_numbers = #tpu.dot_dimension_numbers<[1], [0], [0], [1], [0, 0, 1, 1], [], []>} : vector<128x128xbf16>, vector<128x128xbf16>, vector<128x128xf32> -> vector<128x128xf32>
    %6 = arith.truncf %5 : vector<128x128xf32> to vector<128x128xbf16>
    %7 = tpu.concatenate %4, %6 in 1 : vector<128x128xbf16>, vector<128x128xbf16> -> vector<128x256xbf16>
    %cst_7 = arith.constant dense<0.000000e+00> : vector<128x128xf32>
    %8 = tpu.matmul %7, %2, %cst_7 {dimension_numbers = #tpu.dot_dimension_numbers<[1], [0], [0], [1], [0, 0, 1, 1], [], []>} : vector<128x256xbf16>, vector<256x128xbf16>, vector<128x128xf32> -> vector<128x128xf32>
    %9 = vector.broadcast %3 : vector<1x128xf32> to vector<128x128xf32>
    %10 = arith.addf %8, %9 : vector<128x128xf32>
    %cst_8 = arith.constant 0.000000e+00 : f32
    %11 = vector.broadcast %cst_8 : f32 to vector<128x128xf32>
    %12 = arith.maximumf %10, %11 : vector<128x128xf32>
    %c0_9 = arith.constant 0 : index
    %c0_10 = arith.constant 0 : index
    %13 = vector.load %arg8[%c0_9, %c0_10] : memref<128x128xf32, #tpu.memory_space<vmem>>, vector<128x128xf32>
    tpu.vector_store %arg8[%c0_9, %c0_10], %12 {strides = array<i32>} : memref<128x128xf32, #tpu.memory_space<vmem>>, vector<128x128xf32>,
    %c0_11 = arith.constant 0 : index
    %c0_12 = arith.constant 0 : index
    %14 = vector.load %arg4[%c0_11, %c0_12] : memref<256x128xbf16, #tpu.memory_space<vmem>>, vector<256x128xbf16>
    %c0_13 = arith.constant 0 : index
    %c0_14 = arith.constant 0 : index
    %15 = vector.load %arg5[%c0_13, %c0_14] : memref<1x128xf32, #tpu.memory_space<vmem>>, vector<1x128xf32>
    %16 = arith.truncf %12 : vector<128x128xf32> to vector<128x128xbf16>
    %cst_15 = arith.constant dense<0.000000e+00> : vector<128x128xf32>
    %17 = tpu.matmul %0, %16, %cst_15 {dimension_numbers = #tpu.dot_dimension_numbers<[1], [0], [0], [1], [0, 0, 1, 1], [], []>} : vector<128x128xbf16>, vector<128x128xbf16>, vector<128x128xf32> -> vector<128x128xf32>
    %18 = arith.truncf %17 : vector<128x128xf32> to vector<128x128xbf16>
    %19 = tpu.concatenate %16, %18 in 1 : vector<128x128xbf16>, vector<128x128xbf16> -> vector<128x256xbf16>
    %cst_16 = arith.constant dense<0.000000e+00> : vector<128x128xf32>
    %20 = tpu.matmul %19, %14, %cst_16 {dimension_numbers = #tpu.dot_dimension_numbers<[1], [0], [0], [1], [0, 0, 1, 1], [], []>} : vector<128x256xbf16>, vector<256x128xbf16>, vector<128x128xf32> -> vector<128x128xf32>
    %21 = vector.broadcast %15 : vector<1x128xf32> to vector<128x128xf32>
    %22 = arith.addf %20, %21 : vector<128x128xf32>
    %cst_17 = arith.constant 0.000000e+00 : f32
    %23 = vector.broadcast %cst_17 : f32 to vector<128x128xf32>
    %24 = arith.maximumf %22, %23 : vector<128x128xf32>
    %c0_18 = arith.constant 0 : index
    %c0_19 = arith.constant 0 : index
    %25 = vector.load %arg9[%c0_18, %c0_19] : memref<128x128xf32, #tpu.memory_space<vmem>>, vector<128x128xf32>
    tpu.vector_store %arg9[%c0_18, %c0_19], %24 {strides = array<i32>} : memref<128x128xf32, #tpu.memory_space<vmem>>, vector<128x128xf32>,
    %c0_20 = arith.constant 0 : index
    %c0_21 = arith.constant 0 : index
    %26 = vector.load %arg6[%c0_20, %c0_21] : memref<256x128xbf16, #tpu.memory_space<vmem>>, vector<256x128xbf16>
    %c0_22 = arith.constant 0 : index
    %c0_23 = arith.constant 0 : index
    %27 = vector.load %arg7[%c0_22, %c0_23] : memref<1x128xf32, #tpu.memory_space<vmem>>, vector<1x128xf32>
    %28 = arith.truncf %24 : vector<128x128xf32> to vector<128x128xbf16>
    %cst_24 = arith.constant dense<0.000000e+00> : vector<128x128xf32>
    %29 = tpu.matmul %0, %28, %cst_24 {dimension_numbers = #tpu.dot_dimension_numbers<[1], [0], [0], [1], [0, 0, 1, 1], [], []>} : vector<128x128xbf16>, vector<128x128xbf16>, vector<128x128xf32> -> vector<128x128xf32>
    %30 = arith.truncf %29 : vector<128x128xf32> to vector<128x128xbf16>
    %31 = tpu.concatenate %28, %30 in 1 : vector<128x128xbf16>, vector<128x128xbf16> -> vector<128x256xbf16>
    %cst_25 = arith.constant dense<0.000000e+00> : vector<128x128xf32>
    %32 = tpu.matmul %31, %26, %cst_25 {dimension_numbers = #tpu.dot_dimension_numbers<[1], [0], [0], [1], [0, 0, 1, 1], [], []>} : vector<128x256xbf16>, vector<256x128xbf16>, vector<128x128xf32> -> vector<128x128xf32>
    %33 = vector.broadcast %27 : vector<1x128xf32> to vector<128x128xf32>
    %34 = arith.addf %32, %33 : vector<128x128xf32>
    %c0_26 = arith.constant 0 : index
    %c0_27 = arith.constant 0 : index
    %35 = vector.load %arg10[%c0_26, %c0_27] : memref<128x128xf32, #tpu.memory_space<vmem>>, vector<128x128xf32>
    tpu.vector_store %arg10[%c0_26, %c0_27], %34 {strides = array<i32>} : memref<128x128xf32, #tpu.memory_space<vmem>>, vector<128x128xf32>,
    return
  }
}

</mosaic_0001>

<bundles_post_ra>
// kernel: tpu_custom_call.1
= control target key start
LH: loop header
LB: loop body
LE: loop exit
PB: predicated region body
PF: predicated region fallthrough
CT: control target
= control target key end

     0   :  { %16 = vsyncpa [#allocation3], 0  ;;  %s2475_s0 = inlined_call_operand.hbm [shape: bf16[128,128], index: 0, kind: input, shape index: {}]   ;;  %s2476_s1 = inlined_call_operand.hbm [shape: f32[128,128], index: 1, kind: input, shape index: {}]   ;;  %s2477_s2 = inlined_call_operand.hbm [shape: bf16[256,128], index: 2, kind: input, shape index: {}]   ;;  %s2478_s3 = inlined_call_operand.vmem [shape: f32[1,128], index: 3, kind: input, shape index: {}]   ;;  %s2479_s4 = inlined_call_operand.hbm [shape: bf16[256,128], index: 4, kind: input, shape index: {}]   ;;  %s2480_s5 = inlined_call_operand.vmem [shape: f32[1,128], index: 5, kind: input, shape index: {}]   ;;  %s2481_s6 = inlined_call_operand.hbm [shape: bf16[256,128], index: 6, kind: input, shape index: {}]   ;;  %s2482_s7 = inlined_call_operand.vmem [shape: f32[1,128], index: 7, kind: input, shape index: {}]   ;;  %s2483_s8 = inlined_call_operand.hbm [shape: f32[128,128], index: 8, kind: output, shape index: {0}]   ;;  %s2484_s9 = inlined_call_operand.hbm [shape: f32[128,128], index: 9, kind: output, shape index: {1}]   ;;  %s2485_s10 = inlined_call_operand.hbm [shape: f32[128,128], index: 10, kind: output, shape index: {2}]  }
   0x1   :  { %17 = vsyncpa [#allocation6], 0 }
   0x2   :  { %18 = vsyncpa [#allocation9], 0 }
   0x3   :  { %19 = vsyncpa [#allocation4], 0 }
   0x4   :  { %20 = vsyncpa [#allocation13], 0  ;;  %s2013_s13 = smov [#allocation5]   ;;  %s1827_s17 = scalar_lea.hbm %s2476_s1, 2048 }
   0x5   :  { %s38_s14 = sshll.u32 %s2013_s13, 4  ;;  %p1828_p0 = scmp.ne.s32.totalorder %s2476_s1, %s1827_s17  ;;  %s39_s14 = int_to_ptr.vmem [resolvable:$true] %s38_s14 }
   0x6   :  { %p1831_p1 = scmp.lt.u32.totalorder %s1827_s17, %s2476_s1 }
   0x8   :  { %p1833_p2 = pnand %p1831_p1, %p1828_p0 }
   0xa   :  { %1836 = shalt.err (!%p1833_p2)
}
   0xb   :  { %s1837_s22 = scalar_lea.vmem %s39_s14, 2048  ;;  %p1842_p4 = scmp.lt.s32.totalorder %s39_s14, %s39_s14 }
   0xc   :  { %p1838_p3 = scmp.ne.s32.totalorder %s39_s14, %s1837_s22  ;;  %p1843_p5 = scmp.lt.s32.totalorder %s1837_s22, %s1837_s22 }
   0xe   :  { %p1844_p6 = por %p1843_p5, %p1842_p4 }
  0x10   :  { %p1845_p7 = pnand %p1844_p6, %p1838_p3 }
  0x12   :  { %1848 = shalt.err (!%p1845_p7)
}
  0x13   :  { %s2014_s23 = smov 128   ;;  %s2015_s24 = smov 8  }
  0x14   :  { %44 = dma.hbm_to_vmem [thread:$0]  %s2476_s1, 2048, %s39_s14, [#allocation6], %s2014_s23, %s2014_s23, %s2015_s24  }
  0x15   :  { %s2016_s27 = smov [#allocation8]   ;;  %s2017_s29 = smov [#allocation2]  }
  0x16   :  { %s64_s28 = sshll.u32 %s2016_s27, 4  ;;  %s26_s30 = sshll.u32 %s2017_s29, 4  ;;  %s65_s28 = int_to_ptr.vmem [resolvable:$true] %s64_s28  ;;  %s27_s30 = int_to_ptr.vmem [resolvable:$true] %s26_s30 }
  0x17   :  { %s1849_s13 = scalar_lea.hbm %s2479_s4, 2048 }
  0x18   :  { %p1850_p8 = scmp.ne.s32.totalorder %s2479_s4, %s1849_s13  ;;  %p1853_p9 = scmp.lt.u32.totalorder %s1849_s13, %s2479_s4 }
  0x1a   :  { %p1855_p10 = pnand %p1853_p9, %p1850_p8 }
  0x1c   :  { %1858 = shalt.err (!%p1855_p10)
}
  0x1d   :  { %s1859_s1 = scalar_lea.vmem %s65_s28, 2048  ;;  %p1864_p12 = scmp.lt.s32.totalorder %s65_s28, %s65_s28 }
  0x1e   :  { %p1860_p11 = scmp.ne.s32.totalorder %s65_s28, %s1859_s1  ;;  %p1865_p13 = scmp.lt.s32.totalorder %s1859_s1, %s1859_s1 }
  0x20   :  { %p1866_p0 = por %p1865_p13, %p1864_p12 }
  0x22   :  { %p1867_p1 = pnand %p1866_p0, %p1860_p11 }
  0x24   :  { %1870 = shalt.err (!%p1867_p1)
}
  0x25   :  { %s2018_s14 = smov 64   ;;  %s2019_s19 = smov 4  }
  0x26   :  { %70 = dma.hbm_to_vmem [thread:$0]  %s2479_s4, 2048, %s65_s28, [#allocation9], %s2018_s14, %s2018_s14, %s2019_s19  }
  0x27   :  { %s1871_s26 = scalar_lea.hbm %s2475_s0, 1024 }
  0x28   :  { %p1872_p2 = scmp.ne.s32.totalorder %s2475_s0, %s1871_s26  ;;  %p1875_p3 = scmp.lt.u32.totalorder %s1871_s26, %s2475_s0 }
  0x2a   :  { %p1877_p4 = pnand %p1875_p3, %p1872_p2 }
  0x2c   :  { %1880 = shalt.err (!%p1877_p4)
}
  0x2d   :  { %s1881_s13 = scalar_lea.vmem %s27_s30, 1024  ;;  %p1886_p6 = scmp.lt.s32.totalorder %s27_s30, %s27_s30 }
  0x2e   :  { %p1882_p5 = scmp.ne.s32.totalorder %s27_s30, %s1881_s13  ;;  %p1887_p7 = scmp.lt.s32.totalorder %s1881_s13, %s1881_s13 }
  0x30   :  { %p1888_p8 = por %p1887_p7, %p1886_p6 }
  0x32   :  { %p1889_p9 = pnand %p1888_p8, %p1882_p5 }
  0x34   :  { %1892 = shalt.err (!%p1889_p9)
}
  0x35   :  { %32 = dma.hbm_to_vmem [thread:$0]  %s2475_s0, 1024, %s27_s30, [#allocation3], %s2018_s14, %s2018_s14, %s2019_s19  }
  0x36   :  { %s2020_s15 = smov [#allocation7]   ;;  %s2021_s17 = smov [#allocation10]  }
  0x37   :  { %s50_s16 = sshll.u32 %s2020_s15, 4  ;;  %s78_s18 = sshll.u32 %s2021_s17, 4  ;;  %s51_s16 = int_to_ptr.vmem [resolvable:$true] %s50_s16  ;;  %s79_s18 = int_to_ptr.vmem [resolvable:$true] %s78_s18 }
  0x38   :  { %s1893_s21 = scalar_lea.hbm %s2477_s2, 2048 }
  0x39   :  { %p1894_p10 = scmp.ne.s32.totalorder %s2477_s2, %s1893_s21  ;;  %p1897_p11 = scmp.lt.u32.totalorder %s1893_s21, %s2477_s2 }
  0x3b   :  { %p1899_p12 = pnand %p1897_p11, %p1894_p10 }
  0x3d   :  { %1902 = shalt.err (!%p1899_p12)
}
  0x3e   :  { %s1903_s0 = scalar_lea.vmem %s51_s16, 2048  ;;  %p1908_p0 = scmp.lt.s32.totalorder %s51_s16, %s51_s16 }
  0x3f   :  { %p1904_p13 = scmp.ne.s32.totalorder %s51_s16, %s1903_s0  ;;  %p1909_p1 = scmp.lt.s32.totalorder %s1903_s0, %s1903_s0 }
  0x41   :  { %p1910_p2 = por %p1909_p1, %p1908_p0 }
  0x43   :  { %p1911_p3 = pnand %p1910_p2, %p1904_p13 }
  0x45   :  { %1914 = shalt.err (!%p1911_p3)
}
  0x46   :  { %56 = dma.hbm_to_vmem [thread:$0]  %s2477_s2, 2048, %s51_s16, [#allocation6], %s2018_s14, %s2018_s14, %s2019_s19  }
  0x47   :  { %s1915_s13 = scalar_lea.hbm %s2481_s6, 2048 }
  0x48   :  { %p1916_p4 = scmp.ne.s32.totalorder %s2481_s6, %s1915_s13  ;;  %p1919_p5 = scmp.lt.u32.totalorder %s1915_s13, %s2481_s6 }
  0x4a   :  { %p1921_p6 = pnand %p1919_p5, %p1916_p4 }
  0x4c   :  { %1924 = shalt.err (!%p1921_p6)
}
  0x4d   :  { %s1925_s1 = scalar_lea.vmem %s79_s18, 2048  ;;  %p1930_p8 = scmp.lt.s32.totalorder %s79_s18, %s79_s18 }
  0x4e   :  { %p1926_p7 = scmp.ne.s32.totalorder %s79_s18, %s1925_s1  ;;  %p1931_p9 = scmp.lt.s32.totalorder %s1925_s1, %s1925_s1 }
  0x50   :  { %p1932_p10 = por %p1931_p9, %p1930_p8 }
  0x52   :  { %p1933_p11 = pnand %p1932_p10, %p1926_p7 }
  0x54   :  { %1936 = shalt.err (!%p1933_p11)
}
  0x55   :  { %84 = dma.hbm_to_vmem [thread:$0]  %s2481_s6, 2048, %s79_s18, [#allocation9], %s2018_s14, %s2018_s14, %s2019_s19  }
  0x56   :  { %2003 = dma.done.wait [#allocation3], 1024  }
  0x57   :  { %2004 = vsyncadd [#allocation3], 4294966272 }
  0x58   :  { %2005 = dma.done.wait [#allocation6], 4096  }
  0x59   :  { %2006 = vsyncadd [#allocation6], 4294963200 }
  0x5a   :  { %2007 = dma.done.wait [#allocation9], 4096  }
  0x5b   :  { %2008 = vsyncadd [#allocation9], 4294963200  ;;  %v119_v0 = vld [vmem:[#allocation5] sm:$0xff]  ;;  %v120_v1 = vld [vmem:[#allocation5 + $0x8] sm:$0xff]  ;;  %s2023_s20 = smov [#allocation11]  }
  0x5c   :  { %v121_v2 = vld [vmem:[#allocation5 + $0x10] sm:$0xff]  ;;  %v2155_v3 = vpack.c.bf16 %v120_v1, %v119_v0  ;;  %v122_v4 = vld [vmem:[#allocation5 + $0x18] sm:$0xff]  ;;  %v123_v6 = vld [vmem:[#allocation5 + $0x20] sm:$0xff]  ;;  %s1303_s21 = sshll.u32 %s2023_s20, 4  ;;  %s1304_s21 = int_to_ptr.vmem [resolvable:$true] %s1303_s21 }
  0x5d   :  { %v2157_v5 = vpack.c.bf16 %v122_v4, %v121_v2  ;;  %v124_v7 = vld [vmem:[#allocation5 + $0x28] sm:$0xff]  ;;  %v125_v8 = vld [vmem:[#allocation5 + $0x30] sm:$0xff]  ;;  %v126_v10 = vld [vmem:[#allocation5 + $0x38] sm:$0xff] }
  0x5e   :  { %1647 = vmatprep.subr.bf16.mxu0 %v2155_v3  ;;  %v2162_v9 = vpack.c.bf16 %v124_v7, %v123_v6  ;;  %v2164_v11 = vld [vmem:[#allocation2] sm:$0xff]   ;;  %v2169_v12 = vpack.c.bf16 %v126_v10, %v125_v8  ;;  %v128_v14 = vld [vmem:[#allocation5 + $0x48] sm:$0xff]  ;;  %v129_v15 = vld [vmem:[#allocation5 + $0x50] sm:$0xff] }
  0x5f   :  { %1648 = vmatpush3.bf16.msra.mxu0 %v2155_v3  ;;  %1663 = vmatprep.mubr.bf16.mxu0 %v2164_v11  ;;  %v127_v13 = vld [vmem:[#allocation5 + $0x40] sm:$0xff]  ;;  %v130_v17 = vld [vmem:[#allocation5 + $0x58] sm:$0xff]  ;;  %v132_v21 = vld [vmem:[#allocation5 + $0x68] sm:$0xff] }
  0x60   :  { %1649 = vmatprep.subr.bf16.mxu0 %v2157_v5  ;;  %v2173_v16 = vpack.c.bf16 %v128_v14, %v127_v13  ;;  %v1779_v18 = vld [vmem:[#allocation7 + $0x40] sm:$0xff]   ;;  %v1781_v22 = vld [vmem:[#allocation7 + $0x48] sm:$0xff]   ;;  %v2177_v23 = vpack.c.bf16 %v130_v17, %v129_v15  ;;  %v1783_v25 = vld [vmem:[#allocation7 + $0x50] sm:$0xff]  }
  0x61   :  { %v1780_v19 = vld [vmem:[#allocation7] sm:$0xff]   ;;  %1423 = vmatprep.subr.bf16.mxu1 %v1779_v18  ;;  %v1782_v24 = vld [vmem:[#allocation7 + $0x8] sm:$0xff]   ;;  %v133_v26 = vld [vmem:[#allocation5 + $0x70] sm:$0xff] }
  0x62   :  { %v131_v20 = vld [vmem:[#allocation5 + $0x60] sm:$0xff]  ;;  %1424 = vmatpush3.bf16.msra.mxu1 %v1780_v19  ;;  %v134_v27 = vld [vmem:[#allocation5 + $0x78] sm:$0xff]  ;;  %v1784_v29 = vld [vmem:[#allocation7 + $0x10] sm:$0xff]  }
  0x63   :  { %1650 = vmatpush3.bf16.msra.mxu0 %v2157_v5  ;;  %1425 = vmatprep.subr.bf16.mxu1 %v1781_v22  ;;  %v2181_v28 = vpack.c.bf16 %v132_v21, %v131_v20  ;;  %v1785_v30 = vld [vmem:[#allocation7 + $0x58] sm:$0xff]   ;;  %v2185_v31 = vpack.c.bf16 %v134_v27, %v133_v26  ;;  %v1787_v33 = vld [vmem:[#allocation7 + $0x60] sm:$0xff]   ;;  %v1789_v35 = vld [vmem:[#allocation7 + $0x68] sm:$0xff]  }
  0x64   :  { %1651 = vmatprep.subr.bf16.mxu0 %v2162_v9  ;;  %v1786_v32 = vld [vmem:[#allocation7 + $0x18] sm:$0xff]   ;;  %v1788_v34 = vld [vmem:[#allocation7 + $0x20] sm:$0xff]   ;;  %v2189_v36 = vld [vmem:[#allocation2 + $0x8] sm:$0xff]  }
  0x65   :  { %v2191_v37 = vld [vmem:[#allocation2 + $0x10] sm:$0xff]   ;;  %v1790_v38 = vld [vmem:[#allocation7 + $0x28] sm:$0xff]   ;;  %v2196_v40 = vld [vmem:[#allocation2 + $0x18] sm:$0xff]  }
  0x66   :  { %1426 = vmatpush3.bf16.msra.mxu1 %v1782_v24  ;;  %v1791_v39 = vld [vmem:[#allocation7 + $0x70] sm:$0xff]   ;;  %v2198_v41 = vld [vmem:[#allocation2 + $0x20] sm:$0xff]   ;;  %v2202_v42 = vld [vmem:[#allocation2 + $0x28] sm:$0xff]  }
  0x67   :  { %1652 = vmatpush3.bf16.msra.mxu0 %v2162_v9  ;;  %1427 = vmatprep.subr.bf16.mxu1 %v1783_v25  ;;  %v2204_v43 = vld [vmem:[#allocation2 + $0x30] sm:$0xff]   ;;  %v2208_v44 = vld [vmem:[#allocation2 + $0x38] sm:$0xff]  }
  0x68   :  { %1653 = vmatprep.subr.bf16.mxu0 %v2169_v12  ;;  %v1792_v45 = vld [vmem:[#allocation7 + $0x30] sm:$0xff]   ;;  %v1793_v46 = vld [vmem:[#allocation7 + $0x78] sm:$0xff]  }
  0x69   :  { %v1794_v47 = vld [vmem:[#allocation7 + $0x38] sm:$0xff]  }
  0x6a   :  { %1428 = vmatpush3.bf16.msra.mxu1 %v1784_v29 }
  0x6b   :  { %1654 = vmatpush3.bf16.msra.mxu0 %v2169_v12  ;;  %1429 = vmatprep.subr.bf16.mxu1 %v1785_v30 }
  0x6c   :  { %1655 = vmatprep.subr.bf16.mxu0 %v2173_v16 }
  0x6e   :  { %1430 = vmatpush3.bf16.msra.mxu1 %v1786_v32 }
  0x6f   :  { %1656 = vmatpush3.bf16.msra.mxu0 %v2173_v16  ;;  %1431 = vmatprep.subr.bf16.mxu1 %v1787_v33 }
  0x70   :  { %1657 = vmatprep.subr.bf16.mxu0 %v2177_v23 }
  0x72   :  { %1432 = vmatpush3.bf16.msra.mxu1 %v1788_v34 }
  0x73   :  { %1658 = vmatpush3.bf16.msra.mxu0 %v2177_v23  ;;  %1433 = vmatprep.subr.bf16.mxu1 %v1789_v35 }
  0x74   :  { %1659 = vmatprep.subr.bf16.mxu0 %v2181_v28 }
  0x76   :  { %1434 = vmatpush3.bf16.msra.mxu1 %v1790_v38 }
  0x77   :  { %1660 = vmatpush3.bf16.msra.mxu0 %v2181_v28  ;;  %1435 = vmatprep.subr.bf16.mxu1 %v1791_v39 }
  0x78   :  { %1661 = vmatprep.subr.bf16.mxu0 %v2185_v31 }
  0x7a   :  { %1436 = vmatpush3.bf16.msra.mxu1 %v1792_v45 }
  0x7b   :  { %1662 = vmatpush3.bf16.msra.mxu0 %v2185_v31  ;;  %1437 = vmatprep.subr.bf16.mxu1 %v1793_v46 }
  0x7e   :  { %1664 = vmatmul.mubr.bf16.vlgmr.msra.gmra.mrb[0].mxu0 %v2189_v36  ;;  %1438 = vmatpush3.bf16.msra.mxu1 %v1794_v47 }
  0x7f   :  { %1667 = vmatprep.mubr.bf16.mxu0 %v2191_v37 }
  0x86   :  { %1668 = vmatmul.mubr.bf16.gmra.mrb[4].mxu0 %v2196_v40 }
  0x87   :  { %1671 = vmatprep.mubr.bf16.mxu0 %v2198_v41 }
  0x8e   :  { %1672 = vmatmul.mubr.bf16.gmra.mrb[8].mxu0 %v2202_v42 }
  0x8f   :  { %1675 = vmatprep.mubr.bf16.mxu0 %v2204_v43 }
  0x96   :  { %1676 = vmatmul.mubr.bf16.gmra.mrb[12].mxu0 %v2208_v44 }
  0x97   :  { %1695 = vmatprep.mubr.bf16.mxu0 %v2164_v11 }
 0x151   :  { %v1665_v48 = vpop.f32.mrb[0].mxu0 }
 0x152   :  { %v258_v49 = vpop.f32.mrb[1].mxu0 }
 0x153   :  { %v1666_v50 = vpop.f32.mrb[2].mxu0 }
 0x154   :  { %v322_v51 = vpack.c.bf16 %v1666_v50, %v1665_v48  ;;  %v261_v52 = vpop.f32.mrb[3].mxu0 }
 0x155   :  { %v321_v53 = vpack.c.bf16 %v261_v52, %v258_v49 }
 0x157   :  { %463 = vmatprep.mubr.bf16.mxu1 %v321_v53 }
 0x158   :  { %464 = vmatmul.mubr.bf16.vlgmr.msra.gmra.mrb[0].mxu1 %v2155_v3 }
 0x159   :  { %471 = vmatprep.mubr.bf16.mxu1 %v322_v51  ;;  %v1669_v54 = vpop.f32.mrb[4].mxu0 }
 0x15a   :  { %v274_v55 = vpop.f32.mrb[5].mxu0 }
 0x15b   :  { %v1670_v56 = vpop.f32.mrb[6].mxu0 }
 0x15c   :  { %v324_v57 = vpack.c.bf16 %v1670_v56, %v1669_v54  ;;  %v277_v58 = vpop.f32.mrb[7].mxu0 }
 0x15d   :  { %v323_v59 = vpack.c.bf16 %v277_v58, %v274_v55 }
 0x160   :  { %472 = vmatmul.mubr.bf16.gmra.mrb[4].mxu1 %v2157_v5 }
 0x161   :  { %479 = vmatprep.mubr.bf16.mxu1 %v323_v59  ;;  %v1673_v60 = vpop.f32.mrb[8].mxu0 }
 0x162   :  { %v290_v61 = vpop.f32.mrb[9].mxu0 }
 0x163   :  { %v1674_v62 = vpop.f32.mrb[10].mxu0 }
 0x164   :  { %v326_v63 = vpack.c.bf16 %v1674_v62, %v1673_v60  ;;  %v293_v0 = vpop.f32.mrb[11].mxu0 }
 0x165   :  { %v325_v1 = vpack.c.bf16 %v293_v0, %v290_v61 }
 0x168   :  { %480 = vmatmul.mubr.bf16.gmra.mrb[8].mxu1 %v2162_v9  ;;  %v2224_v9 = vld [vmem:[%s2478_s3] ss:$0 sm:$0xff] }
 0x169   :  { %487 = vmatprep.mubr.bf16.mxu1 %v324_v57  ;;  %v1677_v2 = vpop.f32.mrb[12].mxu0 }
 0x16a   :  { %v306_v3 = vpop.f32.mrb[13].mxu0 }
 0x16b   :  { %v1678_v4 = vpop.f32.mrb[14].mxu0 }
 0x16c   :  { %v328_v6 = vpack.c.bf16 %v1678_v4, %v1677_v2  ;;  %v309_v7 = vpop.f32.mrb[15].mxu0 }
 0x16d   :  { %v327_v8 = vpack.c.bf16 %v309_v7, %v306_v3 }
 0x170   :  { %488 = vmatmul.mubr.bf16.gmra.mrb[12].mxu1 %v2169_v12 }
 0x171   :  { %495 = vmatprep.mubr.bf16.mxu1 %v325_v1 }
 0x178   :  { %496 = vmatmul.mubr.bf16.gmra.mrb[16].mxu1 %v2173_v16 }
 0x179   :  { %503 = vmatprep.mubr.bf16.mxu1 %v326_v63 }
 0x180   :  { %504 = vmatmul.mubr.bf16.gmra.mrb[20].mxu1 %v2177_v23 }
 0x181   :  { %511 = vmatprep.mubr.bf16.mxu1 %v327_v8 }
 0x188   :  { %512 = vmatmul.mubr.bf16.gmra.mrb[24].mxu1 %v2181_v28 }
 0x189   :  { %519 = vmatprep.mubr.bf16.mxu1 %v328_v6 }
 0x190   :  { %520 = vmatmul.mubr.bf16.gmra.mrb[28].mxu1 %v2185_v31 }
 0x191   :  { %1727 = vmatprep.mubr.bf16.mxu1 %v2164_v11 }
 0x22b   :  { %v1439_v5 = vpop.f32.mrb[0].mxu1 }
 0x22c   :  { %v1440_v10 = vpop.f32.mrb[1].mxu1 }
 0x22d   :  { %v1441_v12 = vadd.f32 %v1440_v10, %v1439_v5  ;;  %v1442_v13 = vpop.f32.mrb[2].mxu1 }
 0x22e   :  { %v1443_v14 = vpop.f32.mrb[3].mxu1 }
 0x22f   :  { %v466_v15 = vadd.f32 %v1441_v12, %v2224_v9  ;;  %v1444_v16 = vadd.f32 %v1443_v14, %v1442_v13 }
 0x231   :  { %v528_v17 = vmax.f32 %v466_v15, 0.0  ;;  %v469_v18 = vadd.f32 %v1444_v16, %v2224_v9 }
 0x233   :  { %544 = vst [vmem:[#allocation11] sm:$0xff] %v528_v17  ;;  %v529_v19 = vmax.f32 %v469_v18, 0.0  ;;  %v1445_v20 = vpop.f32.mrb[4].mxu1 }
 0x234   :  { %v1446_v11 = vpop.f32.mrb[5].mxu1 }
 0x235   :  { %545 = vst [vmem:[#allocation11 + $0x8] sm:$0xff] %v529_v19  ;;  %v1447_v21 = vadd.f32 %v1446_v11, %v1445_v20  ;;  %v1448_v22 = vpop.f32.mrb[6].mxu1  ;;  %v2228_v23 = vpack.c.bf16 %v529_v19, %v528_v17 }
 0x236   :  { %v1449_v24 = vpop.f32.mrb[7].mxu1 }
 0x237   :  { %v474_v25 = vadd.f32 %v1447_v21, %v2224_v9  ;;  %v1450_v26 = vadd.f32 %v1449_v24, %v1448_v22  ;;  %1679 = vmatprep.subr.bf16.mxu0 %v2228_v23 }
 0x238   :  { %1680 = vmatpush3.bf16.msra.mxu0 %v2228_v23 }
 0x239   :  { %v530_v27 = vmax.f32 %v474_v25, 0.0  ;;  %v477_v28 = vadd.f32 %v1450_v26, %v2224_v9 }
 0x23b   :  { %546 = vst [vmem:[#allocation11 + $0x10] sm:$0xff] %v530_v27  ;;  %v531_v29 = vmax.f32 %v477_v28, 0.0  ;;  %v1451_v30 = vpop.f32.mrb[8].mxu1 }
 0x23c   :  { %v1452_v31 = vpop.f32.mrb[9].mxu1 }
 0x23d   :  { %547 = vst [vmem:[#allocation11 + $0x18] sm:$0xff] %v531_v29  ;;  %v1453_v32 = vadd.f32 %v1452_v31, %v1451_v30  ;;  %v1454_v33 = vpop.f32.mrb[10].mxu1  ;;  %v2234_v34 = vpack.c.bf16 %v531_v29, %v530_v27 }
 0x23e   :  { %v1455_v35 = vpop.f32.mrb[11].mxu1 }
 0x23f   :  { %v482_v38 = vadd.f32 %v1453_v32, %v2224_v9  ;;  %v1456_v39 = vadd.f32 %v1455_v35, %v1454_v33  ;;  %1681 = vmatprep.subr.bf16.mxu0 %v2234_v34 }
 0x240   :  { %1682 = vmatpush3.bf16.msra.mxu0 %v2234_v34 }
 0x241   :  { %v532_v45 = vmax.f32 %v482_v38, 0.0  ;;  %v485_v46 = vadd.f32 %v1456_v39, %v2224_v9 }
 0x243   :  { %548 = vst [vmem:[#allocation11 + $0x20] sm:$0xff] %v532_v45  ;;  %v533_v47 = vmax.f32 %v485_v46, 0.0  ;;  %v1457_v48 = vpop.f32.mrb[12].mxu1 }
 0x244   :  { %v1458_v49 = vpop.f32.mrb[13].mxu1 }
 0x245   :  { %549 = vst [vmem:[#allocation11 + $0x28] sm:$0xff] %v533_v47  ;;  %v1459_v50 = vadd.f32 %v1458_v49, %v1457_v48  ;;  %v1460_v51 = vpop.f32.mrb[14].mxu1  ;;  %v2240_v52 = vpack.c.bf16 %v533_v47, %v532_v45 }
 0x246   :  { %v1461_v53 = vpop.f32.mrb[15].mxu1 }
 0x247   :  { %v490_v54 = vadd.f32 %v1459_v50, %v2224_v9  ;;  %v1462_v55 = vadd.f32 %v1461_v53, %v1460_v51  ;;  %1683 = vmatprep.subr.bf16.mxu0 %v2240_v52  ;;  %v1795_v50 = vld [vmem:[#allocation8 + $0x40] sm:$0xff]   ;;  %v1797_v53 = vld [vmem:[#allocation8 + $0x48] sm:$0xff]  }
 0x248   :  { %1684 = vmatpush3.bf16.msra.mxu0 %v2240_v52  ;;  %v1796_v51 = vld [vmem:[#allocation8] sm:$0xff]  }
 0x249   :  { %v534_v56 = vmax.f32 %v490_v54, 0.0  ;;  %v493_v57 = vadd.f32 %v1462_v55, %v2224_v9  ;;  %v1798_v54 = vld [vmem:[#allocation8 + $0x8] sm:$0xff]   ;;  %v1800_v55 = vld [vmem:[#allocation8 + $0x10] sm:$0xff]  }
 0x24b   :  { %550 = vst [vmem:[#allocation11 + $0x30] sm:$0xff] %v534_v56  ;;  %v535_v58 = vmax.f32 %v493_v57, 0.0  ;;  %v1463_v59 = vpop.f32.mrb[16].mxu1  ;;  %v1802_v57 = vld [vmem:[#allocation8 + $0x18] sm:$0xff]  }
 0x24c   :  { %v1464_v60 = vpop.f32.mrb[17].mxu1 }
 0x24d   :  { %551 = vst [vmem:[#allocation11 + $0x38] sm:$0xff] %v535_v58  ;;  %v1465_v61 = vadd.f32 %v1464_v60, %v1463_v59  ;;  %v1466_v62 = vpop.f32.mrb[18].mxu1  ;;  %v2246_v63 = vpack.c.bf16 %v535_v58, %v534_v56  ;;  %v1801_v56 = vld [vmem:[#allocation8 + $0x58] sm:$0xff]   ;;  %v1803_v58 = vld [vmem:[#allocation8 + $0x60] sm:$0xff]   ;;  %v1805_v60 = vld [vmem:[#allocation8 + $0x68] sm:$0xff]  }
 0x24e   :  { %v1467_v0 = vpop.f32.mrb[19].mxu1  ;;  %v1804_v59 = vld [vmem:[#allocation8 + $0x20] sm:$0xff]  }
 0x24f   :  { %v498_v1 = vadd.f32 %v1465_v61, %v2224_v9  ;;  %v1468_v2 = vadd.f32 %v1467_v0, %v1466_v62  ;;  %1685 = vmatprep.subr.bf16.mxu0 %v2246_v63  ;;  %v1806_v61 = vld [vmem:[#allocation8 + $0x28] sm:$0xff]   ;;  %v1807_v62 = vld [vmem:[#allocation8 + $0x70] sm:$0xff]  }
 0x250   :  { %1686 = vmatpush3.bf16.msra.mxu0 %v2246_v63  ;;  %v1808_v0 = vld [vmem:[#allocation8 + $0x30] sm:$0xff]  }
 0x251   :  { %v536_v3 = vmax.f32 %v498_v1, 0.0  ;;  %v501_v4 = vadd.f32 %v1468_v2, %v2224_v9  ;;  %v1809_v1 = vld [vmem:[#allocation8 + $0x78] sm:$0xff]  }
 0x252   :  { %v1810_v2 = vld [vmem:[#allocation8 + $0x38] sm:$0xff]  }
 0x253   :  { %552 = vst [vmem:[#allocation11 + $0x40] sm:$0xff] %v536_v3  ;;  %v537_v6 = vmax.f32 %v501_v4, 0.0  ;;  %v1469_v7 = vpop.f32.mrb[20].mxu1 }
 0x254   :  { %v1470_v8 = vpop.f32.mrb[21].mxu1 }
 0x255   :  { %553 = vst [vmem:[#allocation11 + $0x48] sm:$0xff] %v537_v6  ;;  %v1471_v5 = vadd.f32 %v1470_v8, %v1469_v7  ;;  %v1472_v10 = vpop.f32.mrb[22].mxu1  ;;  %v2252_v12 = vpack.c.bf16 %v537_v6, %v536_v3 }
 0x256   :  { %v1473_v13 = vpop.f32.mrb[23].mxu1 }
 0x257   :  { %v506_v14 = vadd.f32 %v1471_v5, %v2224_v9  ;;  %v1474_v15 = vadd.f32 %v1473_v13, %v1472_v10  ;;  %1687 = vmatprep.subr.bf16.mxu0 %v2252_v12 }
 0x258   :  { %1688 = vmatpush3.bf16.msra.mxu0 %v2252_v12 }
 0x259   :  { %v538_v16 = vmax.f32 %v506_v14, 0.0  ;;  %v509_v17 = vadd.f32 %v1474_v15, %v2224_v9 }
 0x25b   :  { %554 = vst [vmem:[#allocation11 + $0x50] sm:$0xff] %v538_v16  ;;  %v539_v18 = vmax.f32 %v509_v17, 0.0  ;;  %v1475_v19 = vpop.f32.mrb[24].mxu1 }
 0x25c   :  { %v1476_v20 = vpop.f32.mrb[25].mxu1 }
 0x25d   :  { %555 = vst [vmem:[#allocation11 + $0x58] sm:$0xff] %v539_v18  ;;  %v1477_v11 = vadd.f32 %v1476_v20, %v1475_v19  ;;  %v1478_v21 = vpop.f32.mrb[26].mxu1  ;;  %v2258_v22 = vpack.c.bf16 %v539_v18, %v538_v16 }
 0x25e   :  { %v1479_v24 = vpop.f32.mrb[27].mxu1 }
 0x25f   :  { %v514_v25 = vadd.f32 %v1477_v11, %v2224_v9  ;;  %v1480_v26 = vadd.f32 %v1479_v24, %v1478_v21  ;;  %1689 = vmatprep.subr.bf16.mxu0 %v2258_v22 }
 0x260   :  { %1690 = vmatpush3.bf16.msra.mxu0 %v2258_v22 }
 0x261   :  { %v540_v27 = vmax.f32 %v514_v25, 0.0  ;;  %v517_v28 = vadd.f32 %v1480_v26, %v2224_v9 }
 0x263   :  { %556 = vst [vmem:[#allocation11 + $0x60] sm:$0xff] %v540_v27  ;;  %v541_v29 = vmax.f32 %v517_v28, 0.0  ;;  %v1481_v30 = vpop.f32.mrb[28].mxu1 }
 0x264   :  { %v1482_v31 = vpop.f32.mrb[29].mxu1 }
 0x265   :  { %557 = vst [vmem:[#allocation11 + $0x68] sm:$0xff] %v541_v29  ;;  %v1483_v32 = vadd.f32 %v1482_v31, %v1481_v30  ;;  %v1484_v33 = vpop.f32.mrb[30].mxu1  ;;  %v2264_v35 = vpack.c.bf16 %v541_v29, %v540_v27  ;;  %v2293_v30 = vld [vmem:[#allocation10 + $0x48] sm:$0xff]   ;;  %v2306_v31 = vld [vmem:[#allocation10 + $0x58] sm:$0xff]  }
 0x266   :  { %v1485_v38 = vpop.f32.mrb[31].mxu1 }
 0x267   :  { %v522_v39 = vadd.f32 %v1483_v32, %v2224_v9  ;;  %v1486_v45 = vadd.f32 %v1485_v38, %v1484_v33  ;;  %1691 = vmatprep.subr.bf16.mxu0 %v2264_v35  ;;  %v2309_v32 = vld [vmem:[#allocation10 + $0x18] sm:$0xff]   ;;  %v2312_v33 = vld [vmem:[#allocation10 + $0x60] sm:$0xff]   ;;  %v2318_v38 = vld [vmem:[#allocation10 + $0x68] sm:$0xff]  }
 0x268   :  { %1692 = vmatpush3.bf16.msra.mxu0 %v2264_v35 }
 0x269   :  { %v542_v46 = vmax.f32 %v522_v39, 0.0  ;;  %v525_v47 = vadd.f32 %v1486_v45, %v2224_v9  ;;  %v1799_v9 = vld [vmem:[#allocation8 + $0x50] sm:$0xff]   ;;  %v2321_v39 = vld [vmem:[#allocation10 + $0x28] sm:$0xff]  }
 0x26a   :  { %v2324_v45 = vld [vmem:[#allocation10 + $0x70] sm:$0xff]  }
 0x26b   :  { %558 = vst [vmem:[#allocation11 + $0x70] sm:$0xff] %v542_v46  ;;  %v543_v48 = vmax.f32 %v525_v47, 0.0  ;;  %v2331_v47 = vld [vmem:[%s2480_s5] ss:$0 sm:$0xff]  ;;  %s2022_s5 = smov [#allocation12]  }
 0x26c   :  { %s1315_s18 = sshll.u32 %s2022_s5, 4  ;;  %s1316_s18 = int_to_ptr.vmem [resolvable:$true] %s1315_s18 }
 0x26d   :  { %559 = vst [vmem:[#allocation11 + $0x78] sm:$0xff] %v543_v48  ;;  %v2270_v49 = vpack.c.bf16 %v543_v48, %v542_v46  ;;  %s1937_s22 = scalar_lea.vmem %s1316_s18, 2048  ;;  %p1942_p13 = scmp.lt.s32.totalorder %s1316_s18, %s1316_s18 }
 0x26e   :  { %p1938_p12 = scmp.ne.s32.totalorder %s1316_s18, %s1937_s22  ;;  %p1943_p0 = scmp.lt.s32.totalorder %s1937_s22, %s1937_s22 }
 0x26f   :  { %1693 = vmatprep.subr.bf16.mxu0 %v2270_v49 }
 0x270   :  { %1694 = vmatpush3.bf16.msra.mxu0 %v2270_v49  ;;  %p1944_p1 = por %p1943_p0, %p1942_p13 }
 0x271   :  { %1503 = vmatprep.subr.bf16.mxu0 %v1795_v50 }
 0x272   :  { %p1945_p2 = pnand %p1944_p1, %p1938_p12 }
 0x273   :  { %1696 = vmatmul.mubr.bf16.vlgmr.msra.gmra.mrb[16].mxu0 %v2189_v36 }
 0x274   :  { %1699 = vmatprep.mubr.bf16.mxu0 %v2191_v37  ;;  %1504 = vmatpush3.bf16.msra.mxu0 %v1796_v51 }
 0x275   :  { %1505 = vmatprep.subr.bf16.mxu0 %v1797_v53 }
 0x278   :  { %1506 = vmatpush3.bf16.msra.mxu0 %v1798_v54 }
 0x279   :  { %1507 = vmatprep.subr.bf16.mxu0 %v1799_v9 }
 0x27b   :  { %1700 = vmatmul.mubr.bf16.gmra.mrb[20].mxu0 %v2196_v40 }
 0x27c   :  { %1703 = vmatprep.mubr.bf16.mxu0 %v2198_v41  ;;  %1508 = vmatpush3.bf16.msra.mxu0 %v1800_v55 }
 0x27d   :  { %1509 = vmatprep.subr.bf16.mxu0 %v1801_v56 }
 0x280   :  { %1510 = vmatpush3.bf16.msra.mxu0 %v1802_v57 }
 0x281   :  { %1511 = vmatprep.subr.bf16.mxu0 %v1803_v58 }
 0x283   :  { %1704 = vmatmul.mubr.bf16.gmra.mrb[24].mxu0 %v2202_v42 }
 0x284   :  { %1707 = vmatprep.mubr.bf16.mxu0 %v2204_v43  ;;  %1512 = vmatpush3.bf16.msra.mxu0 %v1804_v59 }
 0x285   :  { %1513 = vmatprep.subr.bf16.mxu0 %v1805_v60 }
 0x288   :  { %1514 = vmatpush3.bf16.msra.mxu0 %v1806_v61 }
 0x289   :  { %1515 = vmatprep.subr.bf16.mxu0 %v1807_v62 }
 0x28b   :  { %1708 = vmatmul.mubr.bf16.gmra.mrb[28].mxu0 %v2208_v44 }
 0x28c   :  { %1516 = vmatpush3.bf16.msra.mxu0 %v1808_v0 }
 0x28d   :  { %1517 = vmatprep.subr.bf16.mxu0 %v1809_v1 }
 0x290   :  { %1518 = vmatpush3.bf16.msra.mxu0 %v1810_v2 }
 0x346   :  { %v1697_v3 = vpop.f32.mrb[16].mxu0 }
 0x347   :  { %v635_v4 = vpop.f32.mrb[17].mxu0 }
 0x348   :  { %v1698_v6 = vpop.f32.mrb[18].mxu0 }
 0x349   :  { %v699_v7 = vpack.c.bf16 %v1698_v6, %v1697_v3  ;;  %v638_v8 = vpop.f32.mrb[19].mxu0 }
 0x34a   :  { %v698_v5 = vpack.c.bf16 %v638_v8, %v635_v4 }
 0x34c   :  { %840 = vmatprep.mubr.bf16.mxu0 %v698_v5 }
 0x34d   :  { %841 = vmatmul.mubr.bf16.vlgmr.msra.gmra.mrb[32].mxu0 %v2228_v23 }
 0x34e   :  { %848 = vmatprep.mubr.bf16.mxu0 %v699_v7  ;;  %v1701_v10 = vpop.f32.mrb[20].mxu0 }
 0x34f   :  { %v651_v13 = vpop.f32.mrb[21].mxu0 }
 0x350   :  { %v1702_v14 = vpop.f32.mrb[22].mxu0 }
 0x351   :  { %v701_v15 = vpack.c.bf16 %v1702_v14, %v1701_v10  ;;  %v654_v16 = vpop.f32.mrb[23].mxu0 }
 0x352   :  { %v700_v17 = vpack.c.bf16 %v654_v16, %v651_v13 }
 0x355   :  { %849 = vmatmul.mubr.bf16.gmra.mrb[36].mxu0 %v2234_v34  ;;  %v2289_v34 = vld [vmem:[#allocation10 + $0x40] sm:$0xff]  }
 0x356   :  { %856 = vmatprep.mubr.bf16.mxu0 %v700_v17  ;;  %v1705_v18 = vpop.f32.mrb[24].mxu0  ;;  %1583 = vmatprep.subr.bf16.mxu0 %v2289_v34 }
 0x357   :  { %v667_v19 = vpop.f32.mrb[25].mxu0 }
 0x358   :  { %v1706_v20 = vpop.f32.mrb[26].mxu0 }
 0x359   :  { %v703_v11 = vpack.c.bf16 %v1706_v20, %v1705_v18  ;;  %v670_v21 = vpop.f32.mrb[27].mxu0 }
 0x35a   :  { %v702_v24 = vpack.c.bf16 %v670_v21, %v667_v19 }
 0x35d   :  { %857 = vmatmul.mubr.bf16.gmra.mrb[40].mxu0 %v2240_v52  ;;  %v2291_v52 = vld [vmem:[#allocation10] sm:$0xff]  }
 0x35e   :  { %864 = vmatprep.mubr.bf16.mxu0 %v701_v15  ;;  %v1709_v23 = vpop.f32.mrb[28].mxu0  ;;  %1584 = vmatpush3.bf16.msra.mxu0 %v2291_v52 }
 0x35f   :  { %v683_v25 = vpop.f32.mrb[29].mxu0  ;;  %1585 = vmatprep.subr.bf16.mxu0 %v2293_v30 }
 0x360   :  { %v1710_v26 = vpop.f32.mrb[30].mxu0 }
 0x361   :  { %v705_v27 = vpack.c.bf16 %v1710_v26, %v1709_v23  ;;  %v686_v28 = vpop.f32.mrb[31].mxu0 }
 0x362   :  { %v704_v29 = vpack.c.bf16 %v686_v28, %v683_v25 }
 0x365   :  { %865 = vmatmul.mubr.bf16.gmra.mrb[44].mxu0 %v2246_v63  ;;  %v2297_v63 = vld [vmem:[#allocation10 + $0x8] sm:$0xff]  }
 0x366   :  { %872 = vmatprep.mubr.bf16.mxu0 %v702_v24  ;;  %1586 = vmatpush3.bf16.msra.mxu0 %v2297_v63 }
 0x36d   :  { %873 = vmatmul.mubr.bf16.gmra.mrb[48].mxu0 %v2252_v12  ;;  %v2300_v12 = vld [vmem:[#allocation10 + $0x50] sm:$0xff]  }
 0x36e   :  { %880 = vmatprep.mubr.bf16.mxu0 %v703_v11  ;;  %1587 = vmatprep.subr.bf16.mxu0 %v2300_v12 }
 0x375   :  { %881 = vmatmul.mubr.bf16.gmra.mrb[52].mxu0 %v2258_v22  ;;  %v2303_v22 = vld [vmem:[#allocation10 + $0x10] sm:$0xff]  }
 0x376   :  { %888 = vmatprep.mubr.bf16.mxu0 %v704_v29  ;;  %1588 = vmatpush3.bf16.msra.mxu0 %v2303_v22 }
 0x377   :  { %1589 = vmatprep.subr.bf16.mxu0 %v2306_v31 }
 0x37a   :  { %1590 = vmatpush3.bf16.msra.mxu0 %v2309_v32 }
 0x37b   :  { %1591 = vmatprep.subr.bf16.mxu0 %v2312_v33 }
 0x37d   :  { %889 = vmatmul.mubr.bf16.gmra.mrb[56].mxu0 %v2264_v35  ;;  %v2315_v35 = vld [vmem:[#allocation10 + $0x20] sm:$0xff]  }
 0x37e   :  { %896 = vmatprep.mubr.bf16.mxu0 %v705_v27  ;;  %1592 = vmatpush3.bf16.msra.mxu0 %v2315_v35 }
 0x37f   :  { %1593 = vmatprep.subr.bf16.mxu0 %v2318_v38 }
 0x382   :  { %1594 = vmatpush3.bf16.msra.mxu0 %v2321_v39 }
 0x383   :  { %1595 = vmatprep.subr.bf16.mxu0 %v2324_v45 }
 0x385   :  { %897 = vmatmul.mubr.bf16.gmra.mrb[60].mxu0 %v2270_v49 }
 0x420   :  { %v1519_v46 = vpop.f32.mrb[32].mxu0 }
 0x421   :  { %v1520_v48 = vpop.f32.mrb[33].mxu0 }
 0x422   :  { %v1521_v49 = vadd.f32 %v1520_v48, %v1519_v46  ;;  %v1522_v50 = vpop.f32.mrb[34].mxu0 }
 0x423   :  { %v1523_v51 = vpop.f32.mrb[35].mxu0 }
 0x424   :  { %v843_v53 = vadd.f32 %v1521_v49, %v2331_v47  ;;  %v1524_v54 = vadd.f32 %v1523_v51, %v1522_v50 }
 0x426   :  { %v905_v9 = vmax.f32 %v843_v53, 0.0  ;;  %v846_v55 = vadd.f32 %v1524_v54, %v2331_v47 }
 0x428   :  { %921 = vst [vmem:[#allocation12] sm:$0xff] %v905_v9  ;;  %v906_v56 = vmax.f32 %v846_v55, 0.0  ;;  %v1525_v57 = vpop.f32.mrb[36].mxu0 }
 0x429   :  { %v1526_v58 = vpop.f32.mrb[37].mxu0 }
 0x42a   :  { %922 = vst [vmem:[#allocation12 + $0x8] sm:$0xff] %v906_v56  ;;  %v1527_v59 = vadd.f32 %v1526_v58, %v1525_v57  ;;  %v1528_v60 = vpop.f32.mrb[38].mxu0  ;;  %v2335_v61 = vpack.c.bf16 %v906_v56, %v905_v9 }
 0x42b   :  { %v1529_v62 = vpop.f32.mrb[39].mxu0 }
 0x42c   :  { %v851_v0 = vadd.f32 %v1527_v59, %v2331_v47  ;;  %v1530_v1 = vadd.f32 %v1529_v62, %v1528_v60  ;;  %1711 = vmatprep.subr.bf16.mxu1 %v2335_v61 }
 0x42d   :  { %1712 = vmatpush3.bf16.msra.mxu1 %v2335_v61 }
 0x42e   :  { %v907_v2 = vmax.f32 %v851_v0, 0.0  ;;  %v854_v3 = vadd.f32 %v1530_v1, %v2331_v47 }
 0x430   :  { %923 = vst [vmem:[#allocation12 + $0x10] sm:$0xff] %v907_v2  ;;  %v908_v4 = vmax.f32 %v854_v3, 0.0  ;;  %v1531_v6 = vpop.f32.mrb[40].mxu0 }
 0x431   :  { %v1532_v7 = vpop.f32.mrb[41].mxu0 }
 0x432   :  { %924 = vst [vmem:[#allocation12 + $0x18] sm:$0xff] %v908_v4  ;;  %v1533_v8 = vadd.f32 %v1532_v7, %v1531_v6  ;;  %v1534_v5 = vpop.f32.mrb[42].mxu0  ;;  %v2341_v10 = vpack.c.bf16 %v908_v4, %v907_v2 }
 0x433   :  { %v1535_v13 = vpop.f32.mrb[43].mxu0 }
 0x434   :  { %v859_v14 = vadd.f32 %v1533_v8, %v2331_v47  ;;  %v1536_v15 = vadd.f32 %v1535_v13, %v1534_v5  ;;  %1713 = vmatprep.subr.bf16.mxu1 %v2341_v10 }
 0x435   :  { %1714 = vmatpush3.bf16.msra.mxu1 %v2341_v10 }
 0x436   :  { %v909_v16 = vmax.f32 %v859_v14, 0.0  ;;  %v862_v17 = vadd.f32 %v1536_v15, %v2331_v47 }
 0x438   :  { %925 = vst [vmem:[#allocation12 + $0x20] sm:$0xff] %v909_v16  ;;  %v910_v18 = vmax.f32 %v862_v17, 0.0  ;;  %v1537_v19 = vpop.f32.mrb[44].mxu0 }
 0x439   :  { %v1538_v20 = vpop.f32.mrb[45].mxu0 }
 0x43a   :  { %926 = vst [vmem:[#allocation12 + $0x28] sm:$0xff] %v910_v18  ;;  %v1539_v11 = vadd.f32 %v1538_v20, %v1537_v19  ;;  %v1540_v21 = vpop.f32.mrb[46].mxu0  ;;  %v2347_v24 = vpack.c.bf16 %v910_v18, %v909_v16 }
 0x43b   :  { %v1541_v23 = vpop.f32.mrb[47].mxu0 }
 0x43c   :  { %v867_v25 = vadd.f32 %v1539_v11, %v2331_v47  ;;  %v1542_v26 = vadd.f32 %v1541_v23, %v1540_v21  ;;  %1715 = vmatprep.subr.bf16.mxu1 %v2347_v24 }
 0x43d   :  { %1716 = vmatpush3.bf16.msra.mxu1 %v2347_v24 }
 0x43e   :  { %v911_v27 = vmax.f32 %v867_v25, 0.0  ;;  %v870_v28 = vadd.f32 %v1542_v26, %v2331_v47 }
 0x440   :  { %927 = vst [vmem:[#allocation12 + $0x30] sm:$0xff] %v911_v27  ;;  %v912_v29 = vmax.f32 %v870_v28, 0.0  ;;  %v1543_v46 = vpop.f32.mrb[48].mxu0 }
 0x441   :  { %v1544_v48 = vpop.f32.mrb[49].mxu0 }
 0x442   :  { %928 = vst [vmem:[#allocation12 + $0x38] sm:$0xff] %v912_v29  ;;  %v1545_v49 = vadd.f32 %v1544_v48, %v1543_v46  ;;  %v1546_v50 = vpop.f32.mrb[50].mxu0  ;;  %v2353_v51 = vpack.c.bf16 %v912_v29, %v911_v27 }
 0x443   :  { %v1547_v53 = vpop.f32.mrb[51].mxu0 }
 0x444   :  { %v875_v54 = vadd.f32 %v1545_v49, %v2331_v47  ;;  %v1548_v9 = vadd.f32 %v1547_v53, %v1546_v50  ;;  %1717 = vmatprep.subr.bf16.mxu1 %v2353_v51 }
 0x445   :  { %1718 = vmatpush3.bf16.msra.mxu1 %v2353_v51 }
 0x446   :  { %v913_v55 = vmax.f32 %v875_v54, 0.0  ;;  %v878_v56 = vadd.f32 %v1548_v9, %v2331_v47 }
 0x448   :  { %929 = vst [vmem:[#allocation12 + $0x40] sm:$0xff] %v913_v55  ;;  %v914_v57 = vmax.f32 %v878_v56, 0.0  ;;  %v1549_v58 = vpop.f32.mrb[52].mxu0 }
 0x449   :  { %v1550_v59 = vpop.f32.mrb[53].mxu0 }
 0x44a   :  { %930 = vst [vmem:[#allocation12 + $0x48] sm:$0xff] %v914_v57  ;;  %v1551_v60 = vadd.f32 %v1550_v59, %v1549_v58  ;;  %v1552_v62 = vpop.f32.mrb[54].mxu0  ;;  %v2359_v0 = vpack.c.bf16 %v914_v57, %v913_v55 }
 0x44b   :  { %v1553_v1 = vpop.f32.mrb[55].mxu0 }
 0x44c   :  { %v883_v2 = vadd.f32 %v1551_v60, %v2331_v47  ;;  %v1554_v3 = vadd.f32 %v1553_v1, %v1552_v62  ;;  %1719 = vmatprep.subr.bf16.mxu1 %v2359_v0 }
 0x44d   :  { %1720 = vmatpush3.bf16.msra.mxu1 %v2359_v0 }
 0x44e   :  { %v915_v4 = vmax.f32 %v883_v2, 0.0  ;;  %v886_v6 = vadd.f32 %v1554_v3, %v2331_v47 }
 0x450   :  { %931 = vst [vmem:[#allocation12 + $0x50] sm:$0xff] %v915_v4  ;;  %v916_v7 = vmax.f32 %v886_v6, 0.0  ;;  %v1555_v8 = vpop.f32.mrb[56].mxu0 }
 0x451   :  { %v1556_v5 = vpop.f32.mrb[57].mxu0 }
 0x452   :  { %932 = vst [vmem:[#allocation12 + $0x58] sm:$0xff] %v916_v7  ;;  %v1557_v13 = vadd.f32 %v1556_v5, %v1555_v8  ;;  %v1558_v14 = vpop.f32.mrb[58].mxu0  ;;  %v2365_v15 = vpack.c.bf16 %v916_v7, %v915_v4 }
 0x453   :  { %v1559_v16 = vpop.f32.mrb[59].mxu0 }
 0x454   :  { %v891_v17 = vadd.f32 %v1557_v13, %v2331_v47  ;;  %v1560_v18 = vadd.f32 %v1559_v16, %v1558_v14  ;;  %1721 = vmatprep.subr.bf16.mxu1 %v2365_v15 }
 0x455   :  { %1722 = vmatpush3.bf16.msra.mxu1 %v2365_v15 }
 0x456   :  { %v917_v19 = vmax.f32 %v891_v17, 0.0  ;;  %v894_v20 = vadd.f32 %v1560_v18, %v2331_v47 }
 0x458   :  { %933 = vst [vmem:[#allocation12 + $0x60] sm:$0xff] %v917_v19  ;;  %v918_v11 = vmax.f32 %v894_v20, 0.0  ;;  %v1561_v21 = vpop.f32.mrb[60].mxu0 }
 0x459   :  { %v1562_v23 = vpop.f32.mrb[61].mxu0 }
 0x45a   :  { %934 = vst [vmem:[#allocation12 + $0x68] sm:$0xff] %v918_v11  ;;  %v1563_v25 = vadd.f32 %v1562_v23, %v1561_v21  ;;  %v1564_v26 = vpop.f32.mrb[62].mxu0  ;;  %v2371_v27 = vpack.c.bf16 %v918_v11, %v917_v19 }
 0x45b   :  { %v1565_v28 = vpop.f32.mrb[63].mxu0 }
 0x45c   :  { %v899_v29 = vadd.f32 %v1563_v25, %v2331_v47  ;;  %v1566_v46 = vadd.f32 %v1565_v28, %v1564_v26  ;;  %1723 = vmatprep.subr.bf16.mxu1 %v2371_v27 }
 0x45d   :  { %1724 = vmatpush3.bf16.msra.mxu1 %v2371_v27 }
 0x45e   :  { %v919_v48 = vmax.f32 %v899_v29, 0.0  ;;  %v902_v49 = vadd.f32 %v1566_v46, %v2331_v47 }
 0x460   :  { %935 = vst [vmem:[#allocation12 + $0x70] sm:$0xff] %v919_v48  ;;  %v920_v50 = vmax.f32 %v902_v49, 0.0 }
 0x462   :  { %936 = vst [vmem:[#allocation12 + $0x78] sm:$0xff] %v920_v50  ;;  %v2377_v53 = vpack.c.bf16 %v920_v50, %v919_v48 }
 0x464   :  { %1725 = vmatprep.subr.bf16.mxu1 %v2377_v53 }
 0x465   :  { %1726 = vmatpush3.bf16.msra.mxu1 %v2377_v53 }
 0x466   :  { %1743 = vmatprep.subr.bf16.mxu1 %v2289_v34 }
 0x468   :  { %1728 = vmatmul.mubr.bf16.vlgmr.msra.gmra.mrb[32].mxu1 %v2189_v36  ;;  %v1824_v36 = vld [vmem:[#allocation10 + $0x30] sm:$0xff]  }
 0x469   :  { %1731 = vmatprep.mubr.bf16.mxu1 %v2191_v37  ;;  %1751 = vmatpush3.bf16.msra.mxu1 %v2291_v52  ;;  %v1825_v37 = vld [vmem:[#allocation10 + $0x78] sm:$0xff]  }
 0x46a   :  { %1744 = vmatprep.subr.bf16.mxu1 %v2293_v30  ;;  %1596 = vmatpush3.bf16.msra.mxu0 %v1824_v36 }
 0x46b   :  { %1597 = vmatprep.subr.bf16.mxu0 %v1825_v37 }
 0x46d   :  { %1752 = vmatpush3.bf16.msra.mxu1 %v2297_v63 }
 0x46e   :  { %1745 = vmatprep.subr.bf16.mxu1 %v2300_v12 }
 0x470   :  { %1732 = vmatmul.mubr.bf16.gmra.mrb[36].mxu1 %v2196_v40  ;;  %v1826_v40 = vld [vmem:[#allocation10 + $0x38] sm:$0xff]  }
 0x471   :  { %1735 = vmatprep.mubr.bf16.mxu1 %v2198_v41  ;;  %1753 = vmatpush3.bf16.msra.mxu1 %v2303_v22 }
 0x472   :  { %1746 = vmatprep.subr.bf16.mxu1 %v2306_v31  ;;  %1598 = vmatpush3.bf16.msra.mxu0 %v1826_v40 }
 0x475   :  { %1754 = vmatpush3.bf16.msra.mxu1 %v2309_v32 }
 0x476   :  { %1747 = vmatprep.subr.bf16.mxu1 %v2312_v33 }
 0x478   :  { %1736 = vmatmul.mubr.bf16.gmra.mrb[40].mxu1 %v2202_v42 }
 0x479   :  { %1739 = vmatprep.mubr.bf16.mxu1 %v2204_v43  ;;  %1755 = vmatpush3.bf16.msra.mxu1 %v2315_v35 }
 0x47a   :  { %1748 = vmatprep.subr.bf16.mxu1 %v2318_v38 }
 0x47d   :  { %1756 = vmatpush3.bf16.msra.mxu1 %v2321_v39 }
 0x47e   :  { %1749 = vmatprep.subr.bf16.mxu1 %v2324_v45 }
 0x480   :  { %1740 = vmatmul.mubr.bf16.gmra.mrb[44].mxu1 %v2208_v44 }
 0x481   :  { %1757 = vmatpush3.bf16.msra.mxu1 %v1824_v36 }
 0x482   :  { %1750 = vmatprep.subr.bf16.mxu1 %v1825_v37 }
 0x485   :  { %1758 = vmatpush3.bf16.msra.mxu1 %v1826_v40 }
 0x53b   :  { %v1729_v41 = vpop.f32.mrb[32].mxu1 }
 0x53c   :  { %v1012_v42 = vpop.f32.mrb[33].mxu1 }
 0x53d   :  { %v1730_v43 = vpop.f32.mrb[34].mxu1 }
 0x53e   :  { %v1076_v34 = vpack.c.bf16 %v1730_v43, %v1729_v41  ;;  %v1015_v52 = vpop.f32.mrb[35].mxu1 }
 0x53f   :  { %v1075_v30 = vpack.c.bf16 %v1015_v52, %v1012_v42 }
 0x541   :  { %1217 = vmatprep.mubr.bf16.mxu0 %v1075_v30 }
 0x542   :  { %1218 = vmatmul.mubr.bf16.vlgmr.msra.gmra.mrb[64].mxu0 %v2335_v61 }
 0x543   :  { %v1733_v63 = vpop.f32.mrb[36].mxu1  ;;  %1225 = vmatprep.mubr.bf16.mxu0 %v1076_v34 }
 0x544   :  { %v1028_v44 = vpop.f32.mrb[37].mxu1 }
 0x545   :  { %v1734_v12 = vpop.f32.mrb[38].mxu1 }
 0x546   :  { %v1078_v22 = vpack.c.bf16 %v1734_v12, %v1733_v63  ;;  %v1031_v31 = vpop.f32.mrb[39].mxu1 }
 0x547   :  { %v1077_v32 = vpack.c.bf16 %v1031_v31, %v1028_v44 }
 0x549   :  { %1233 = vmatprep.mubr.bf16.mxu1 %v1077_v32 }
 0x54a   :  { %1226 = vmatmul.mubr.bf16.gmra.mrb[68].mxu0 %v2341_v10  ;;  %1234 = vmatmul.mubr.bf16.vlgmr.msra.gmra.mrb[48].mxu1 %v2347_v24 }
 0x54b   :  { %1241 = vmatprep.mubr.bf16.mxu1 %v1078_v22  ;;  %v1737_v33 = vpop.f32.mrb[40].mxu1 }
 0x54c   :  { %v1044_v35 = vpop.f32.mrb[41].mxu1 }
 0x54d   :  { %v1738_v38 = vpop.f32.mrb[42].mxu1 }
 0x54e   :  { %v1080_v39 = vpack.c.bf16 %v1738_v38, %v1737_v33  ;;  %v1047_v45 = vpop.f32.mrb[43].mxu1 }
 0x54f   :  { %v1079_v47 = vpack.c.bf16 %v1047_v45, %v1044_v35 }
 0x552   :  { %1242 = vmatmul.mubr.bf16.gmra.mrb[52].mxu1 %v2353_v51 }
 0x553   :  { %1249 = vmatprep.mubr.bf16.mxu1 %v1079_v47  ;;  %v1741_v61 = vpop.f32.mrb[44].mxu1 }
 0x554   :  { %v1060_v54 = vpop.f32.mrb[45].mxu1 }
 0x555   :  { %v1742_v9 = vpop.f32.mrb[46].mxu1 }
 0x556   :  { %v1082_v55 = vpack.c.bf16 %v1742_v9, %v1741_v61  ;;  %v1063_v56 = vpop.f32.mrb[47].mxu1 }
 0x557   :  { %v1081_v57 = vpack.c.bf16 %v1063_v56, %v1060_v54 }
 0x55a   :  { %1250 = vmatmul.mubr.bf16.gmra.mrb[56].mxu1 %v2359_v0 }
 0x55b   :  { %1257 = vmatprep.mubr.bf16.mxu1 %v1080_v39 }
 0x562   :  { %1258 = vmatmul.mubr.bf16.gmra.mrb[60].mxu1 %v2365_v15 }
 0x563   :  { %1265 = vmatprep.mubr.bf16.mxu1 %v1081_v57 }
 0x56a   :  { %1266 = vmatmul.mubr.bf16.gmra.mrb[64].mxu1 %v2371_v27 }
 0x56b   :  { %1273 = vmatprep.mubr.bf16.mxu1 %v1082_v55 }
 0x572   :  { %1274 = vmatmul.mubr.bf16.gmra.mrb[68].mxu1 %v2377_v53 }
 0x573   :  { %1948 = shalt.err (!%p1945_p2)
}
 0x574   :  { %s1949_s27 = scalar_lea.hbm %s2484_s9, 2048 }
 0x575   :  { %p1950_p3 = scmp.ne.s32.totalorder %s2484_s9, %s1949_s27  ;;  %p1953_p4 = scmp.lt.u32.totalorder %s1949_s27, %s2484_s9 }
 0x577   :  { %p1955_p5 = pnand %p1953_p4, %p1950_p3 }
 0x579   :  { %1958 = shalt.err (!%p1955_p5)
}
 0x57a   :  { %1321 = dma.vmem_to_hbm [thread:$0]  %s1316_s18, 2048, %s2484_s9, [#allocation13], %s2014_s23, %s2014_s23, %s2015_s24  }
 0x57b   :  { %s1959_s4 = scalar_lea.vmem %s1304_s21, 2048  ;;  %p1964_p7 = scmp.lt.s32.totalorder %s1304_s21, %s1304_s21 }
 0x57c   :  { %p1960_p6 = scmp.ne.s32.totalorder %s1304_s21, %s1959_s4  ;;  %p1965_p8 = scmp.lt.s32.totalorder %s1959_s4, %s1959_s4 }
 0x57e   :  { %p1966_p9 = por %p1965_p8, %p1964_p7 }
 0x580   :  { %p1967_p10 = pnand %p1966_p9, %p1960_p6 }
 0x582   :  { %1970 = shalt.err (!%p1967_p10)
}
 0x583   :  { %s1971_s17 = scalar_lea.hbm %s2483_s8, 2048 }
 0x584   :  { %p1972_p11 = scmp.ne.s32.totalorder %s2483_s8, %s1971_s17  ;;  %p1975_p12 = scmp.lt.u32.totalorder %s1971_s17, %s2483_s8 }
 0x586   :  { %p1977_p13 = pnand %p1975_p12, %p1972_p11 }
 0x588   :  { %1980 = shalt.err (!%p1977_p13)
}
 0x589   :  { %1309 = dma.vmem_to_hbm [thread:$0]  %s1304_s21, 2048, %s2483_s8, [#allocation4], %s2014_s23, %s2014_s23, %s2015_s24  }
 0x58a   :  { %v2442_v24 = vld [vmem:[%s2482_s7] ss:$0 sm:$0xff]  ;;  %s2024_s7 = smov [#allocation14]  }
 0x58b   :  { %s1327_s8 = sshll.u32 %s2024_s7, 4  ;;  %s1328_s8 = int_to_ptr.vmem [resolvable:$true] %s1327_s8 }
 0x58c   :  { %s1981_s5 = scalar_lea.vmem %s1328_s8, 2048  ;;  %p1986_p1 = scmp.lt.s32.totalorder %s1328_s8, %s1328_s8 }
 0x58d   :  { %p1982_p0 = scmp.ne.s32.totalorder %s1328_s8, %s1981_s5  ;;  %p1987_p2 = scmp.lt.s32.totalorder %s1981_s5, %s1981_s5 }
 0x58f   :  { %p1988_p3 = por %p1987_p2, %p1986_p1 }
 0x591   :  { %p1989_p4 = pnand %p1988_p3, %p1982_p0 }
 0x615   :  { %v1599_v10 = vpop.f32.mrb[64].mxu0 }
 0x616   :  { %v1600_v51 = vpop.f32.mrb[65].mxu0 }
 0x617   :  { %v1601_v58 = vadd.f32 %v1600_v51, %v1599_v10  ;;  %v1602_v59 = vpop.f32.mrb[66].mxu0 }
 0x618   :  { %v1603_v60 = vpop.f32.mrb[67].mxu0 }
 0x619   :  { %v1220_v62 = vadd.f32 %v1601_v58, %v2442_v24  ;;  %v1604_v0 = vadd.f32 %v1603_v60, %v1602_v59 }
 0x61b   :  { %1282 = vst [vmem:[#allocation14] sm:$0xff] %v1220_v62  ;;  %v1223_v1 = vadd.f32 %v1604_v0, %v2442_v24 }
 0x61d   :  { %1283 = vst [vmem:[#allocation14 + $0x8] sm:$0xff] %v1223_v1  ;;  %v1605_v2 = vpop.f32.mrb[68].mxu0  ;;  %v1611_v3 = vpop.f32.mrb[48].mxu1 }
 0x61e   :  { %v1606_v4 = vpop.f32.mrb[69].mxu0  ;;  %v1612_v6 = vpop.f32.mrb[49].mxu1 }
 0x61f   :  { %v1607_v7 = vadd.f32 %v1606_v4, %v1605_v2  ;;  %v1613_v8 = vadd.f32 %v1612_v6, %v1611_v3  ;;  %v1608_v5 = vpop.f32.mrb[70].mxu0  ;;  %v1614_v13 = vpop.f32.mrb[50].mxu1 }
 0x620   :  { %v1609_v14 = vpop.f32.mrb[71].mxu0  ;;  %v1615_v15 = vpop.f32.mrb[51].mxu1 }
 0x621   :  { %v1228_v16 = vadd.f32 %v1607_v7, %v2442_v24  ;;  %v1236_v17 = vadd.f32 %v1613_v8, %v2442_v24  ;;  %v1610_v18 = vadd.f32 %v1609_v14, %v1608_v5  ;;  %v1616_v19 = vadd.f32 %v1615_v15, %v1614_v13 }
 0x623   :  { %1284 = vst [vmem:[#allocation14 + $0x10] sm:$0xff] %v1228_v16  ;;  %1286 = vst [vmem:[#allocation14 + $0x20] sm:$0xff] %v1236_v17  ;;  %v1231_v20 = vadd.f32 %v1610_v18, %v2442_v24  ;;  %v1239_v11 = vadd.f32 %v1616_v19, %v2442_v24 }
 0x625   :  { %1285 = vst [vmem:[#allocation14 + $0x18] sm:$0xff] %v1231_v20  ;;  %1287 = vst [vmem:[#allocation14 + $0x28] sm:$0xff] %v1239_v11  ;;  %v1617_v21 = vpop.f32.mrb[52].mxu1 }
 0x626   :  { %v1618_v23 = vpop.f32.mrb[53].mxu1 }
 0x627   :  { %v1619_v25 = vadd.f32 %v1618_v23, %v1617_v21  ;;  %v1620_v26 = vpop.f32.mrb[54].mxu1 }
 0x628   :  { %v1621_v27 = vpop.f32.mrb[55].mxu1 }
 0x629   :  { %v1244_v28 = vadd.f32 %v1619_v25, %v2442_v24  ;;  %v1622_v29 = vadd.f32 %v1621_v27, %v1620_v26 }
 0x62b   :  { %1288 = vst [vmem:[#allocation14 + $0x30] sm:$0xff] %v1244_v28  ;;  %v1247_v46 = vadd.f32 %v1622_v29, %v2442_v24 }
 0x62d   :  { %1289 = vst [vmem:[#allocation14 + $0x38] sm:$0xff] %v1247_v46  ;;  %v1623_v48 = vpop.f32.mrb[56].mxu1 }
 0x62e   :  { %v1624_v49 = vpop.f32.mrb[57].mxu1 }
 0x62f   :  { %v1625_v50 = vadd.f32 %v1624_v49, %v1623_v48  ;;  %v1626_v53 = vpop.f32.mrb[58].mxu1 }
 0x630   :  { %v1627_v36 = vpop.f32.mrb[59].mxu1 }
 0x631   :  { %v1252_v37 = vadd.f32 %v1625_v50, %v2442_v24  ;;  %v1628_v40 = vadd.f32 %v1627_v36, %v1626_v53 }
 0x633   :  { %1290 = vst [vmem:[#allocation14 + $0x40] sm:$0xff] %v1252_v37  ;;  %v1255_v41 = vadd.f32 %v1628_v40, %v2442_v24 }
 0x635   :  { %1291 = vst [vmem:[#allocation14 + $0x48] sm:$0xff] %v1255_v41  ;;  %v1629_v42 = vpop.f32.mrb[60].mxu1 }
 0x636   :  { %v1630_v43 = vpop.f32.mrb[61].mxu1 }
 0x637   :  { %v1631_v34 = vadd.f32 %v1630_v43, %v1629_v42  ;;  %v1632_v52 = vpop.f32.mrb[62].mxu1 }
 0x638   :  { %v1633_v30 = vpop.f32.mrb[63].mxu1 }
 0x639   :  { %v1260_v63 = vadd.f32 %v1631_v34, %v2442_v24  ;;  %v1634_v44 = vadd.f32 %v1633_v30, %v1632_v52 }
 0x63b   :  { %1292 = vst [vmem:[#allocation14 + $0x50] sm:$0xff] %v1260_v63  ;;  %v1263_v12 = vadd.f32 %v1634_v44, %v2442_v24 }
 0x63d   :  { %1293 = vst [vmem:[#allocation14 + $0x58] sm:$0xff] %v1263_v12  ;;  %v1635_v22 = vpop.f32.mrb[64].mxu1 }
 0x63e   :  { %v1636_v31 = vpop.f32.mrb[65].mxu1 }
 0x63f   :  { %v1637_v32 = vadd.f32 %v1636_v31, %v1635_v22  ;;  %v1638_v33 = vpop.f32.mrb[66].mxu1 }
 0x640   :  { %v1639_v35 = vpop.f32.mrb[67].mxu1 }
 0x641   :  { %v1268_v38 = vadd.f32 %v1637_v32, %v2442_v24  ;;  %v1640_v39 = vadd.f32 %v1639_v35, %v1638_v33 }
 0x643   :  { %1294 = vst [vmem:[#allocation14 + $0x60] sm:$0xff] %v1268_v38  ;;  %v1271_v45 = vadd.f32 %v1640_v39, %v2442_v24 }
 0x645   :  { %1295 = vst [vmem:[#allocation14 + $0x68] sm:$0xff] %v1271_v45  ;;  %v1641_v47 = vpop.f32.mrb[68].mxu1 }
 0x646   :  { %v1642_v61 = vpop.f32.mrb[69].mxu1 }
 0x647   :  { %v1643_v54 = vadd.f32 %v1642_v61, %v1641_v47  ;;  %v1644_v9 = vpop.f32.mrb[70].mxu1 }
 0x648   :  { %v1645_v55 = vpop.f32.mrb[71].mxu1 }
 0x649   :  { %v1276_v56 = vadd.f32 %v1643_v54, %v2442_v24  ;;  %v1646_v57 = vadd.f32 %v1645_v55, %v1644_v9 }
 0x64b   :  { %1296 = vst [vmem:[#allocation14 + $0x70] sm:$0xff] %v1276_v56  ;;  %v1279_v10 = vadd.f32 %v1646_v57, %v2442_v24 }
 0x64d   :  { %1297 = vst [vmem:[#allocation14 + $0x78] sm:$0xff] %v1279_v10 }
 0x64e   :  { %1992 = shalt.err (!%p1989_p4)
}
 0x64f   :  { %s1993_s21 = scalar_lea.hbm %s2485_s10, 2048 }
 0x650   :  { %p1994_p5 = scmp.ne.s32.totalorder %s2485_s10, %s1993_s21  ;;  %p1997_p6 = scmp.lt.u32.totalorder %s1993_s21, %s2485_s10 }
 0x652   :  { %p1999_p7 = pnand %p1997_p6, %p1994_p5 }
 0x654   :  { %2002 = shalt.err (!%p1999_p7)
}
 0x655   :  { %1333 = dma.vmem_to_hbm [thread:$0]  %s1328_s8, 2048, %s2485_s10, [#allocation13], %s2014_s23, %s2014_s23, %s2015_s24  }
 0x656   :  { %2009 = dma.done.wait [#allocation4], 2048  }
 0x657   :  { %2010 = vsyncadd [#allocation4], 4294965248 }
 0x658   :  { %2011 = dma.done.wait [#allocation13], 4096  }
 0x659   :  { %2012 = vsyncadd [#allocation13], 4294963200 }
 0x65a   :  { %1343 = vsyncpa [#allocation3], 1 }
 0x65b   :  { %1344 = vsyncpa [#allocation6], 1 }
 0x65c   :  { %1345 = vsyncpa [#allocation9], 1 }
 0x65d   :  { %1346 = vsyncpa [#allocation4], 1 }
 0x65e   :  { %1347 = vsyncpa [#allocation13], 1 }

</bundles_post_ra>
